<compile_context>
chip_gen: v5e
topology: v5e:2x2
jax: 0.10.0
libtpu: 0.0.40
codegen_flags: <defaults>
</compile_context>

<pallas_src>
import functools

import jax
import jax.numpy as jnp
from jax.experimental import pallas as pl
from jax.experimental.pallas import tpu as pltpu

LEAKY_SLOPE = 0.01  # nn.LeakyReLU default negative_slope


def _leaky_relu(x):
    return jnp.where(x > 0, x, LEAKY_SLOPE * x)


def _round_up(x, m):
    return (x + m - 1) // m * m


# -----------------------------------------------------------------------------
# One-time, cached hardware / capability queries (kept out of the hot path).
# -----------------------------------------------------------------------------
_VMEM_CAP_BYTES = None
_SINGLE_BUFFER_OK = None


def _vmem_capacity_bytes():
    """Per-TensorCore VMEM capacity; conservative 64 MiB (v7x) if unknown."""
    global _VMEM_CAP_BYTES
    if _VMEM_CAP_BYTES is None:
        cap = 64 << 20
        try:
            info = pltpu.get_tpu_info()
            cap = int(getattr(info, "vmem_capacity_bytes", cap)) or cap
        except Exception:  # query unavailable -> keep the conservative default
            pass
        _VMEM_CAP_BYTES = cap
    return _VMEM_CAP_BYTES


def _single_buffer_supported():
    """One-time probe: does this jax build accept pl.Buffered(buffer_count=1)?"""
    global _SINGLE_BUFFER_OK
    if _SINGLE_BUFFER_OK is None:
        try:
            def _copy(a_ref, o_ref):
                o_ref[...] = a_ref[...]

            probe = pl.pallas_call(
                _copy,
                out_shape=jax.ShapeDtypeStruct((16, 128), jnp.float32),
                grid=(2,),
                in_specs=[pl.BlockSpec((16, 128), lambda i: (0, 0),
                                       pipeline_mode=pl.Buffered(buffer_count=1))],
                out_specs=pl.BlockSpec((16, 128), lambda i: (0, 0)),
            )(jnp.zeros((16, 128), jnp.float32))
            jax.block_until_ready(probe)
            _SINGLE_BUFFER_OK = True
        except Exception:  # tiny one-time probe only; real calls never hit this
            _SINGLE_BUFFER_OK = False
    return _SINGLE_BUFFER_OK


# -----------------------------------------------------------------------------
# Kernels
# -----------------------------------------------------------------------------
def _fused_mlp_kernel(x_ref, w1_ref, b1_ref, w2_ref, b2_ref, w3_ref, b3_ref, o_ref):
    # One VMEM-resident batch tile flows through all three matmuls.
    # x arrives in its input precision and is cast on the VPU right before the first
    # dot; all dots accumulate in f32 on the MXU.
    x = x_ref[...].astype(w1_ref.dtype)
    h = jnp.dot(x, w1_ref[...], preferred_element_type=jnp.float32) + b1_ref[...]
    h = _leaky_relu(h)
    h = jnp.dot(h.astype(w2_ref.dtype), w2_ref[...],
                preferred_element_type=jnp.float32) + b2_ref[...]
    h = _leaky_relu(h)
    h = jnp.dot(h.astype(w3_ref.dtype), w3_ref[...],
                preferred_element_type=jnp.float32) + b3_ref[...]
    o_ref[...] = _leaky_relu(h).astype(o_ref.dtype)


def _dense_act_kernel(x_ref, w_ref, b_ref, o_ref, acc_ref):
    # Weight-tiled Linear + LeakyReLU: grid = (M, N, K); f32 accumulator in VMEM.
    @pl.when(pl.program_id(2) == 0)
    def _():
        acc_ref[...] = jnp.zeros_like(acc_ref)

    acc_ref[...] += jnp.dot(x_ref[...].astype(w_ref.dtype), w_ref[...],
                            preferred_element_type=jnp.float32)

    @pl.when(pl.program_id(2) == pl.num_programs(2) - 1)
    def _():
        o_ref[...] = _leaky_relu(acc_ref[...] + b_ref[...]).astype(o_ref.dtype)


def _pick_tile(dim_p, candidates):
    # dim_p is always a multiple of 128, so this always terminates at <=128.
    for c in candidates:
        if dim_p % c == 0:
            return min(c, dim_p)
    return dim_p


def _dense_act(x, w, b, out_dtype, tm, vmem_limit):
    """One weight-tiled Linear+LeakyReLU pallas_call (fallback path layer)."""
    m_p, k_p = x.shape
    n_p = w.shape[1]
    tk = _pick_tile(k_p, (512, 256, 128))
    tn = _pick_tile(n_p, (256, 128))
    grid = (m_p // tm, n_p // tn, k_p // tk)
    return pl.pallas_call(
        _dense_act_kernel,
        out_shape=jax.ShapeDtypeStruct((m_p, n_p), out_dtype),
        grid_spec=pltpu.PrefetchScalarGridSpec(
            num_scalar_prefetch=0,
            grid=grid,
            in_specs=[
                pl.BlockSpec((tm, tk), lambda i, j, k: (i, k)),
                pl.BlockSpec((tk, tn), lambda i, j, k: (k, j)),
                pl.BlockSpec((1, tn), lambda i, j, k: (0, j)),
            ],
            out_specs=pl.BlockSpec((tm, tn), lambda i, j, k: (i, j)),
            scratch_shapes=[pltpu.VMEM((tm, tn), jnp.float32)],
        ),
        compiler_params=pltpu.CompilerParams(
            dimension_semantics=("parallel", "parallel", "arbitrary"),
            vmem_limit_bytes=vmem_limit,
        ),
    )(x, w, b)


# -----------------------------------------------------------------------------
# Jitted forward (pad/cast + pallas_call(s) + slice fused into one dispatch)
# -----------------------------------------------------------------------------
@functools.partial(
    jax.jit,
    static_argnames=("batch_tile", "use_bf16", "out_dtype_name",
                     "single_buffer", "vmem_cap", "force_tiled"))
def _fc_layer_impl(x, w1, b1, w2, b2, w3, b3, *, batch_tile, use_bf16,
                   out_dtype_name, single_buffer, vmem_cap, force_tiled):
    B, in_size = x.shape
    hid = w1.shape[1]
    hid2 = w2.shape[1]
    out_size = w3.shape[1]
    out_dtype = jnp.dtype(out_dtype_name)
    compute_dtype = jnp.bfloat16 if use_bf16 else jnp.float32

    ALIGN = 16  # bf16-safe row (sublane) multiple for batch tiles
    in_p = _round_up(in_size, 128)    # lane-dense feature dims
    hid_p = _round_up(hid, 128)
    hid2_p = _round_up(hid2, 128)
    out_p = _round_up(out_size, 128)
    # TODO(synk): on v6e/v7x, benchmark padding odd multiples of 128 up to 256 for
    # full 256x256 MXU occupancy when compute-bound.

    # --- batch tile: multiple of 16; >=2 grid steps for larger batches so a v7x
    # megacore split has work on both TensorCores; capped at 512 rows per tile.
    if batch_tile is None:
        if B <= 256:
            batch_tile = _round_up(B, ALIGN)
        else:
            batch_tile = min(_round_up(pl.cdiv(B, 2), ALIGN), 512)
    batch_tile = max(ALIGN, _round_up(int(batch_tile), ALIGN))
    B_p = _round_up(B, batch_tile)
    grid = (B_p // batch_tile,)

    # --- VMEM budgeting (per-TensorCore, generation aware) ---
    w_item = jnp.dtype(compute_dtype).itemsize
    x_item = jnp.dtype(x.dtype).itemsize
    o_item = jnp.dtype(out_dtype).itemsize
    wbuf = 1 if single_buffer else 2
    vmem_limit = int(0.88 * vmem_cap)          # ~56 MiB on v7x, ~112 MiB on v5e/v6e
    budget = int(0.75 * vmem_cap)              # headroom for compiler scratch

    def fused_footprint(tile):
        weight_bytes = (in_p * hid_p + hid_p * hid2_p + hid2_p * out_p) * w_item * wbuf
        bias_bytes = (hid_p + hid2_p + out_p) * 4 * wbuf
        io_bytes = 2 * tile * (in_p * x_item + out_p * o_item)   # double-buffered x / y
        tmp_bytes = 3 * tile * max(hid_p, hid2_p, out_p) * 4      # f32 intermediates
        return weight_bytes + bias_bytes + io_bytes + tmp_bytes

    use_fused = (not force_tiled) and fused_footprint(batch_tile) <= budget
    if (not force_tiled) and (not use_fused) and batch_tile > 128:
        # shrink the batch tile before abandoning the fully fused path
        small = max(ALIGN, min(128, _round_up(B, ALIGN)))
        if fused_footprint(small) <= budget:
            batch_tile = small
            B_p = _round_up(B, batch_tile)
            grid = (B_p // batch_tile,)
            use_fused = True

    # --- padding (zero padding is exact through Linear + LeakyReLU) ---
    def pad2(a, rows, cols, dtype):
        a = a.astype(jnp.float32)
        pr, pc = rows - a.shape[0], cols - a.shape[1]
        if pr or pc:
            a = jnp.pad(a, ((0, pr), (0, pc)))
        return a.astype(dtype)

    if B_p != B or in_p != in_size:
        # padding needed anyway -> fold the compute-dtype cast into the same pass
        x_p = pad2(x, B_p, in_p, compute_dtype)
    else:
        # aligned: pass x through untouched; the kernel casts on the VPU (no extra
        # HBM round trip for a bf16 copy of x)
        x_p = x
    w1p = pad2(w1, in_p, hid_p, compute_dtype)
    w2p = pad2(w2, hid_p, hid2_p, compute_dtype)
    w3p = pad2(w3, hid2_p, out_p, compute_dtype)
    b1p = pad2(b1, 1, hid_p, jnp.float32)
    b2p = pad2(b2, 1, hid2_p, jnp.float32)
    b3p = pad2(b3, 1, out_p, jnp.float32)

    if use_fused:
        spec_kwargs = (
            {"pipeline_mode": pl.Buffered(buffer_count=1)} if single_buffer else {})

        def const_spec(shape):
            # Same block every grid step -> weights/biases stay resident in VMEM.
            return pl.BlockSpec(shape, lambda i: (0,) * len(shape), **spec_kwargs)

        out_padded = pl.pallas_call(
            _fused_mlp_kernel,
            out_shape=jax.ShapeDtypeStruct((B_p, out_p), out_dtype),
            grid_spec=pltpu.PrefetchScalarGridSpec(
                num_scalar_prefetch=0,
                grid=grid,
                in_specs=[
                    pl.BlockSpec((batch_tile, in_p), lambda i: (i, 0)),
                    const_spec((in_p, hid_p)),
                    const_spec((1, hid_p)),
                    const_spec((hid_p, hid2_p)),
                    const_spec((1, hid2_p)),
                    const_spec((hid2_p, out_p)),
                    const_spec((1, out_p)),
                ],
                out_specs=pl.BlockSpec((batch_tile, out_p), lambda i: (i, 0)),
            ),
            compiler_params=pltpu.CompilerParams(
                dimension_semantics=("parallel",),
                vmem_limit_bytes=vmem_limit,
            ),
        )(x_p, w1p, b1p, w2p, b2p, w3p, b3p)
    else:
        # Tiled-weight fallback (e.g. large hidden sizes on v7x's 64 MiB/TC VMEM):
        # three weight-tiled matmul+bias+LeakyReLU calls, intermediates kept in
        # compute_dtype (bf16) to minimize HBM traffic between layers.
        tiled_limit = min(vmem_limit, 64 << 20)
        h = _dense_act(x_p, w1p, b1p, compute_dtype, batch_tile, tiled_limit)
        h = _dense_act(h, w2p, b2p, compute_dtype, batch_tile, tiled_limit)
        out_padded = _dense_act(h, w3p, b3p, out_dtype, batch_tile, tiled_limit)

    if B_p != B or out_p != out_size:
        return out_padded[:B, :out_size]
    return out_padded


def fc_layer_forward(x, params, *, batch_tile=None, use_bf16=True, out_dtype=None,
                     single_buffer_weights=True, force_tiled=False):
    """Forward pass of the fc_layer module.

    x: [B, input_size]; params: dict of w1,b1,w2,b2,w3,b3 with weights [in, out].
    out_dtype: output dtype (default x.dtype; pass jnp.bfloat16 to halve writeback).
    """
    out_dtype = x.dtype if out_dtype is None else jnp.dtype(out_dtype)
    single_buffer = bool(single_buffer_weights) and _single_buffer_supported()
    return _fc_layer_impl(
        x, params["w1"], params["b1"], params["w2"], params["b2"],
        params["w3"], params["b3"],
        batch_tile=batch_tile,
        use_bf16=bool(use_bf16),
        out_dtype_name=jnp.dtype(out_dtype).name,
        single_buffer=single_buffer,
        vmem_cap=_vmem_capacity_bytes(),
        force_tiled=bool(force_tiled),
    )


# -----------------------------------------------------------------------------
# Parameter init matching the PyTorch module, and a pure-JAX reference.
# -----------------------------------------------------------------------------
def xavier_uniform(key, fan_in, fan_out, dtype=jnp.float32):
    # matches torch.nn.init.xavier_uniform_ (gain=1); stored as [fan_in, fan_out]
    limit = (6.0 / (fan_in + fan_out)) ** 0.5
    return jax.random.uniform(key, (fan_in, fan_out), dtype, -limit, limit)


def init_params(key, input_size, hidden_size, output_size):
    h2 = hidden_size // 2
    k1, k2, k3, kb1, kb2, kb3 = jax.random.split(key, 6)

    def torch_bias(k, fan_in, n):
        # nn.Linear default bias init: U(-1/sqrt(fan_in), 1/sqrt(fan_in))
        bound = 1.0 / (fan_in ** 0.5)
        return jax.random.uniform(k, (1, n), jnp.float32, -bound, bound)

    return {
        "w1": xavier_uniform(k1, input_size, hidden_size),
        "b1": torch_bias(kb1, input_size, hidden_size),
        "w2": xavier_uniform(k2, hidden_size, h2),
        "b2": torch_bias(kb2, hidden_size, h2),
        "w3": xavier_uniform(k3, h2, output_size),
        "b3": torch_bias(kb3, h2, output_size),
    }


def fc_layer_ref(x, p, compute_dtype=jnp.float32):
    def dense(h, w, b):
        return jnp.dot(h.astype(compute_dtype), w.astype(compute_dtype),
                       preferred_element_type=jnp.float32) + b
    h = _leaky_relu(dense(x, p["w1"], p["b1"]))
    h = _leaky_relu(dense(h, p["w2"], p["b2"]))
    return _leaky_relu(dense(h, p["w3"], p["b3"]))


if __name__ == "__main__":
    key = jax.random.PRNGKey(0)
    kx, kp, kx2, kp2 = jax.random.split(key, 4)

    # Small config consistent with the module.
    input_size, hidden_size, output_size = 32, 32, 16
    batch = 8
    x = jax.random.normal(kx, (batch, input_size), jnp.float32)
    params = init_params(kp, input_size, hidden_size, output_size)

    # f32 path: tight check against the f32 reference.
    out_f32 = jax.block_until_ready(fc_layer_forward(x, params, use_bf16=False))
    ref_f32 = fc_layer_ref(x, params)
    assert out_f32.shape == (batch, output_size)
    assert jnp.allclose(out_f32, ref_f32, atol=1e-4, rtol=1e-4)

    # bf16 MXU path (default): check against a bf16-operand reference.
    out_bf16 = jax.block_until_ready(fc_layer_forward(x, params))
    ref_bf16 = fc_layer_ref(x, params, compute_dtype=jnp.bfloat16)
    assert jnp.allclose(out_bf16, ref_bf16, atol=1e-2, rtol=1e-2)

    # Larger config exercising batch padding, lane padding, and a multi-step
    # (pipelined / megacore-shardable) grid.
    in2, hid2, out2 = 96, 192, 40
    batch2 = 1037
    x2 = jax.random.normal(kx2, (batch2, in2), jnp.float32)
    params2 = init_params(kp2, in2, hid2, out2)
    y2 = jax.block_until_ready(fc_layer_forward(x2, params2))
    ref2 = fc_layer_ref(x2, params2, compute_dtype=jnp.bfloat16)
    assert y2.shape == (batch2, out2)
    assert jnp.allclose(y2, ref2, atol=1e-2, rtol=1e-2)

    # Tiled-weight fallback path (used when resident weights do not fit per-TC VMEM,
    # e.g. large hidden sizes on v7x): exercise it at small shapes for correctness.
    y2_t = jax.block_until_ready(fc_layer_forward(x2, params2, force_tiled=True))
    assert y2_t.shape == (batch2, out2)
    assert jnp.allclose(y2_t, ref2, atol=1e-2, rtol=1e-2)

    print("KERNEL_OK")
</pallas_src>

<mosaic_0001>
module attributes {stable_mosaic.version = 11 : i64} {
  func.func @_copy(%arg0: i32, %arg1: memref<16x128xf32, #tpu.memory_space<vmem>>, %arg2: memref<16x128xf32, #tpu.memory_space<vmem>>) attributes {dimension_semantics = [#tpu.dimension_semantics<arbitrary>], iteration_bounds = array<i64: 2>, scalar_prefetch = 0 : i64, scratch_operands = 0 : i64, tpu.core_type = #tpu.core_type<tc>, window_params = [{pipeline_mode = #tpu.pipeline_mode<synchronous>, transform_indices = @transform_0, window_bounds = array<i64: 16, 128>}, {pipeline_mode = #tpu.pipeline_mode<synchronous>, transform_indices = @transform_1, window_bounds = array<i64: 16, 128>}]} {
    %c0 = arith.constant 0 : index
    %c0_0 = arith.constant 0 : index
    %0 = vector.load %arg1[%c0, %c0_0] : memref<16x128xf32, #tpu.memory_space<vmem>>, vector<16x128xf32>
    %c0_1 = arith.constant 0 : index
    %c0_2 = arith.constant 0 : index
    %1 = vector.load %arg2[%c0_1, %c0_2] : memref<16x128xf32, #tpu.memory_space<vmem>>, vector<16x128xf32>
    tpu.vector_store %arg2[%c0_1, %c0_2], %0 {strides = array<i32>} : memref<16x128xf32, #tpu.memory_space<vmem>>, vector<16x128xf32>,
    return
  }
  func.func @transform_0(%arg0: i32) -> (i32, i32) {
    %c0_i32 = arith.constant 0 : i32
    %c0_i32_0 = arith.constant 0 : i32
    %c0_i32_1 = arith.constant 0 : i32
    return %c0_i32, %c0_i32_0 : i32, i32
  }
  func.func @transform_1(%arg0: i32) -> (i32, i32) {
    %c0_i32 = arith.constant 0 : i32
    %c0_i32_0 = arith.constant 0 : i32
    %c0_i32_1 = arith.constant 0 : i32
    return %c0_i32, %c0_i32_0 : i32, i32
  }
}

module attributes {stable_mosaic.version = 11 : i64} {
  func.func @_fused_mlp_kernel(%arg0: i32, %arg1: memref<16x128xf32, #tpu.memory_space<vmem>>, %arg2: memref<128x128xf32, #tpu.memory_space<vmem>>, %arg3: memref<1x128xf32, #tpu.memory_space<vmem>>, %arg4: memref<128x128xf32, #tpu.memory_space<vmem>>, %arg5: memref<1x128xf32, #tpu.memory_space<vmem>>, %arg6: memref<128x128xf32, #tpu.memory_space<vmem>>, %arg7: memref<1x128xf32, #tpu.memory_space<vmem>>, %arg8: memref<16x128xf32, #tpu.memory_space<vmem>>) attributes {dimension_semantics = [#tpu.dimension_semantics<parallel>], iteration_bounds = array<i64: 1>, scalar_prefetch = 0 : i64, scratch_operands = 0 : i64, tpu.core_type = #tpu.core_type<tc>, window_params = [{transform_indices = @transform_0, window_bounds = array<i64: 16, 128>}, {pipeline_mode = #tpu.pipeline_mode<synchronous>, transform_indices = @transform_1, window_bounds = array<i64: 128, 128>}, {pipeline_mode = #tpu.pipeline_mode<synchronous>, transform_indices = @transform_2, window_bounds = array<i64: 1, 128>}, {pipeline_mode = #tpu.pipeline_mode<synchronous>, transform_indices = @transform_3, window_bounds = array<i64: 128, 128>}, {pipeline_mode = #tpu.pipeline_mode<synchronous>, transform_indices = @transform_4, window_bounds = array<i64: 1, 128>}, {pipeline_mode = #tpu.pipeline_mode<synchronous>, transform_indices = @transform_5, window_bounds = array<i64: 128, 128>}, {pipeline_mode = #tpu.pipeline_mode<synchronous>, transform_indices = @transform_6, window_bounds = array<i64: 1, 128>}, {transform_indices = @transform_7, window_bounds = array<i64: 16, 128>}]} {
    %c0 = arith.constant 0 : index
    %c0_0 = arith.constant 0 : index
    %0 = vector.load %arg1[%c0, %c0_0] : memref<16x128xf32, #tpu.memory_space<vmem>>, vector<16x128xf32>
    %c0_1 = arith.constant 0 : index
    %c0_2 = arith.constant 0 : index
    %1 = vector.load %arg2[%c0_1, %c0_2] : memref<128x128xf32, #tpu.memory_space<vmem>>, vector<128x128xf32>
    %cst = arith.constant dense<0.000000e+00> : vector<16x128xf32>
    %2 = tpu.matmul %0, %1, %cst {dimension_numbers = #tpu.dot_dimension_numbers<[1], [0], [0], [1], [0, 0, 1, 1], [], []>} : vector<16x128xf32>, vector<128x128xf32>, vector<16x128xf32> -> vector<16x128xf32>
    %c0_3 = arith.constant 0 : index
    %c0_4 = arith.constant 0 : index
    %3 = vector.load %arg3[%c0_3, %c0_4] : memref<1x128xf32, #tpu.memory_space<vmem>>, vector<1x128xf32>
    %4 = vector.broadcast %3 : vector<1x128xf32> to vector<16x128xf32>
    %5 = arith.addf %2, %4 : vector<16x128xf32>
    %cst_5 = arith.constant 0.000000e+00 : f32
    %6 = vector.broadcast %cst_5 : f32 to vector<16x128xf32>
    %7 = arith.cmpf ogt, %5, %6 : vector<16x128xf32>
    %cst_6 = arith.constant 0.00999999977 : f32
    %8 = vector.broadcast %cst_6 : f32 to vector<16x128xf32>
    %9 = arith.mulf %8, %5 : vector<16x128xf32>
    %10 = arith.select %7, %5, %9 : vector<16x128xi1>, vector<16x128xf32>
    %c0_7 = arith.constant 0 : index
    %c0_8 = arith.constant 0 : index
    %11 = vector.load %arg4[%c0_7, %c0_8] : memref<128x128xf32, #tpu.memory_space<vmem>>, vector<128x128xf32>
    %cst_9 = arith.constant dense<0.000000e+00> : vector<16x128xf32>
    %12 = tpu.matmul %10, %11, %cst_9 {dimension_numbers = #tpu.dot_dimension_numbers<[1], [0], [0], [1], [0, 0, 1, 1], [], []>} : vector<16x128xf32>, vector<128x128xf32>, vector<16x128xf32> -> vector<16x128xf32>
    %c0_10 = arith.constant 0 : index
    %c0_11 = arith.constant 0 : index
    %13 = vector.load %arg5[%c0_10, %c0_11] : memref<1x128xf32, #tpu.memory_space<vmem>>, vector<1x128xf32>
    %14 = vector.broadcast %13 : vector<1x128xf32> to vector<16x128xf32>
    %15 = arith.addf %12, %14 : vector<16x128xf32>
    %cst_12 = arith.constant 0.000000e+00 : f32
    %16 = vector.broadcast %cst_12 : f32 to vector<16x128xf32>
    %17 = arith.cmpf ogt, %15, %16 : vector<16x128xf32>
    %cst_13 = arith.constant 0.00999999977 : f32
    %18 = vector.broadcast %cst_13 : f32 to vector<16x128xf32>
    %19 = arith.mulf %18, %15 : vector<16x128xf32>
    %20 = arith.select %17, %15, %19 : vector<16x128xi1>, vector<16x128xf32>
    %c0_14 = arith.constant 0 : index
    %c0_15 = arith.constant 0 : index
    %21 = vector.load %arg6[%c0_14, %c0_15] : memref<128x128xf32, #tpu.memory_space<vmem>>, vector<128x128xf32>
    %cst_16 = arith.constant dense<0.000000e+00> : vector<16x128xf32>
    %22 = tpu.matmul %20, %21, %cst_16 {dimension_numbers = #tpu.dot_dimension_numbers<[1], [0], [0], [1], [0, 0, 1, 1], [], []>} : vector<16x128xf32>, vector<128x128xf32>, vector<16x128xf32> -> vector<16x128xf32>
    %c0_17 = arith.constant 0 : index
    %c0_18 = arith.constant 0 : index
    %23 = vector.load %arg7[%c0_17, %c0_18] : memref<1x128xf32, #tpu.memory_space<vmem>>, vector<1x128xf32>
    %24 = vector.broadcast %23 : vector<1x128xf32> to vector<16x128xf32>
    %25 = arith.addf %22, %24 : vector<16x128xf32>
    %cst_19 = arith.constant 0.000000e+00 : f32
    %26 = vector.broadcast %cst_19 : f32 to vector<16x128xf32>
    %27 = arith.cmpf ogt, %25, %26 : vector<16x128xf32>
    %cst_20 = arith.constant 0.00999999977 : f32
    %28 = vector.broadcast %cst_20 : f32 to vector<16x128xf32>
    %29 = arith.mulf %28, %25 : vector<16x128xf32>
    %30 = arith.select %27, %25, %29 : vector<16x128xi1>, vector<16x128xf32>
    %c0_21 = arith.constant 0 : index
    %c0_22 = arith.constant 0 : index
    %31 = vector.load %arg8[%c0_21, %c0_22] : memref<16x128xf32, #tpu.memory_space<vmem>>, vector<16x128xf32>
    tpu.vector_store %arg8[%c0_21, %c0_22], %30 {strides = array<i32>} : memref<16x128xf32, #tpu.memory_space<vmem>>, vector<16x128xf32>,
    return
  }
  func.func @transform_0(%arg0: i32) -> (i32, i32) {
    %c0_i32 = arith.constant 0 : i32
    %c0_i32_0 = arith.constant 0 : i32
    return %arg0, %c0_i32 : i32, i32
  }
  func.func @transform_1(%arg0: i32) -> (i32, i32) {
    %c0_i32 = arith.constant 0 : i32
    %c0_i32_0 = arith.constant 0 : i32
    %c0_i32_1 = arith.constant 0 : i32
    return %c0_i32, %c0_i32_0 : i32, i32
  }
  func.func @transform_2(%arg0: i32) -> (i32, i32) {
    %c0_i32 = arith.constant 0 : i32
    %c0_i32_0 = arith.constant 0 : i32
    %c0_i32_1 = arith.constant 0 : i32
    return %c0_i32, %c0_i32_0 : i32, i32
  }
  func.func @transform_3(%arg0: i32) -> (i32, i32) {
    %c0_i32 = arith.constant 0 : i32
    %c0_i32_0 = arith.constant 0 : i32
    %c0_i32_1 = arith.constant 0 : i32
    return %c0_i32, %c0_i32_0 : i32, i32
  }
  func.func @transform_4(%arg0: i32) -> (i32, i32) {
    %c0_i32 = arith.constant 0 : i32
    %c0_i32_0 = arith.constant 0 : i32
    %c0_i32_1 = arith.constant 0 : i32
    return %c0_i32, %c0_i32_0 : i32, i32
  }
  func.func @transform_5(%arg0: i32) -> (i32, i32) {
    %c0_i32 = arith.constant 0 : i32
    %c0_i32_0 = arith.constant 0 : i32
    %c0_i32_1 = arith.constant 0 : i32
    return %c0_i32, %c0_i32_0 : i32, i32
  }
  func.func @transform_6(%arg0: i32) -> (i32, i32) {
    %c0_i32 = arith.constant 0 : i32
    %c0_i32_0 = arith.constant 0 : i32
    %c0_i32_1 = arith.constant 0 : i32
    return %c0_i32, %c0_i32_0 : i32, i32
  }
  func.func @transform_7(%arg0: i32) -> (i32, i32) {
    %c0_i32 = arith.constant 0 : i32
    %c0_i32_0 = arith.constant 0 : i32
    return %arg0, %c0_i32 : i32, i32
  }
}

</mosaic_0001>

<bundles_post_ra>
// kernel: tpu_custom_call.1
= control target key start
LH: loop header
LB: loop body
LE: loop exit
PB: predicated region body
PF: predicated region fallthrough
CT: control target
= control target key end

     0   :  { %6 = vsyncpa [#allocation3], 0  ;;  %s300_s0 = inlined_call_operand.hbm [shape: f32[16,128], index: 0, kind: input, shape index: {}]   ;;  %s301_s1 = inlined_call_operand.hbm [shape: f32[16,128], index: 1, kind: output, shape index: {}]  }
   0x1   :  { %7 = vsyncpa [#allocation4], 0  ;;  %s283_s6 = smov 0  }
   0x2 LB: > { %s71_s9 = sshll.u32 %s300_s0, 4  ;;  %s154_s10 = sadd.s32 4294967295, %s265_s6   ;;  %s265_s6 = sphi %s283_s6, %s13_s6   ;;  %s72_s9 = int_to_ptr.hbm [resolvable:$true] %s71_s9 }
   0x3   : > { %p155_p0 = scmp.ge.s32.totalorder %s265_s6, 1  ;;  %p60_p1 = scmp.lt.s32.totalorder %s265_s6, 3 }
   0x4   : > { %p175_p2 = scmp.eq.s32.totalorder %s154_s10, 0  ;;  %s267_s11 = smov [#allocation2]  }
   0x5   : > { %p61_p3 = pnand %p155_p0, %p60_p1  ;;  %s73_s12 = sshll.u32 %s267_s11, 4  ;;  %s74_s12 = int_to_ptr.vmem [resolvable:$true] %s73_s12 }
   0x6   : > { %s268_s13 = smov 128   ;;  %s269_s14 = smov 8  }
   0x7   : > { %p171_p4 = pneg %p61_p3  ;;  %89 = sbr.rel (%p61_p3) target bundleno = 19 (0x13), region = 24 }
   0x9   : > { %p172_p5 = pnand %p175_p2, %p171_p4 }
   0xb   : > { %174 = dma.hbm_to_vmem [thread:$0]  (!%p172_p5), %s72_s9, 256, %s74_s12, [#allocation3], %s268_s13, %s268_s13, %s269_s14  }
   0xc   : > { %256 = dma.done.wait (%p175_p2), [#allocation3], 256  }
   0xd   : > { %258 = vsyncadd (%p175_p2), [#allocation3], 4294967040  ;;  %s270_s15 = smov [#allocation5]   ;;  %s111_s19 = sshll.u32 %s301_s1, 4  ;;  %v100_v0 = vld [vmem:[#allocation2] sm:$0xff]  ;;  %v101_v1 = vld [vmem:[#allocation2 + $0x8] sm:$0xff]  ;;  %s112_s19 = int_to_ptr.hbm [resolvable:$true] %s111_s19 }
   0xe   : > { %s109_s16 = sshll.u32 %s270_s15, 4  ;;  %p177_p6 = scmp.eq.s32.totalorder %s154_s10, 1  ;;  %102 = vst [vmem:[#allocation5] sm:$0xff] %v100_v0  ;;  %s110_s16 = int_to_ptr.vmem [resolvable:$true] %s109_s16 }
   0xf   : > { %103 = vst [vmem:[#allocation5 + $0x8] sm:$0xff] %v101_v1  ;;  %s271_s20 = smov 128   ;;  %s272_s21 = smov 8  }
  0x10   : > { %168 = dma.vmem_to_hbm [thread:$0]  (%p177_p6), %s110_s16, 256, %s112_s19, [#allocation4], %s271_s20, %s271_s20, %s272_s21  }
  0x11   : > { %260 = dma.done.wait (%p177_p6), [#allocation4], 256  }
  0x12   : > { %262 = vsyncadd (%p177_p6), [#allocation4], 4294967040 }
  0x13 PF: > { %s13_s6 = sadd.s32 1, %s265_s6  }
  0x14   : > { %p10_p7 = scmp.ge.s32.totalorder %s13_s6, 4  }
  0x16   :  { %12 = sbr.rel (!%p10_p7) target bundleno = 2 (0x2), region = 53 }
  0x1b   :  { %128 = vsyncpa [#allocation3], 1 }
  0x1c   :  { %130 = vsyncpa [#allocation3 + $0x1], 1 }
  0x1d   :  { %131 = vsyncpa [#allocation4], 1 }
  0x1e   :  { %133 = vsyncpa [#allocation4 + $0x1], 1 }

// kernel: _fc_layer_impl.1
= control target key start
LH: loop header
LB: loop body
LE: loop exit
PB: predicated region body
PF: predicated region fallthrough
CT: control target
= control target key end

     0   :  { %s405_s1 = inlined_call_operand.vmem [shape: f32[128,128], index: 1, kind: input, shape index: {}]   ;;  %s406_s3 = inlined_call_operand.vmem [shape: f32[128,128], index: 3, kind: input, shape index: {}]   ;;  %s407_s2 = inlined_call_operand.vmem [shape: f32[1,128], index: 2, kind: input, shape index: {}]   ;;  %s408_s0 = inlined_call_operand.vmem [shape: f32[16,128], index: 0, kind: input, shape index: {}]   ;;  %s409_s4 = inlined_call_operand.vmem [shape: f32[1,128], index: 4, kind: input, shape index: {}]   ;;  %s410_s5 = inlined_call_operand.vmem [shape: f32[128,128], index: 5, kind: input, shape index: {}]   ;;  %s411_s6 = inlined_call_operand.vmem [shape: f32[1,128], index: 6, kind: input, shape index: {}]   ;;  %s412_s7 = inlined_call_operand.vmem [shape: f32[16,128], index: 7, kind: output, shape index: {}]  }
   0x1   :  { %v43_v0 = vld [vmem:[%s405_s1 + $0x78] sm:$0xff]  ;;  %v42_v1 = vld [vmem:[%s405_s1 + $0x70] sm:$0xff]  ;;  %v41_v2 = vld [vmem:[%s405_s1 + $0x68] sm:$0xff] }
   0x2   :  { %48 = vmatpush.msra.mxu0 %v43_v0  ;;  %181 = vmatpush.msra.mxu3 %v43_v0  ;;  %v40_v3 = vld [vmem:[%s405_s1 + $0x60] sm:$0xff]  ;;  %v39_v4 = vld [vmem:[%s405_s1 + $0x58] sm:$0xff]  ;;  %v91_v6 = vld [vmem:[%s406_s3 + $0x70] sm:$0xff] }
   0x3   :  { %v92_v5 = vld [vmem:[%s406_s3 + $0x78] sm:$0xff]  ;;  %v38_v7 = vld [vmem:[%s405_s1 + $0x50] sm:$0xff]  ;;  %v90_v8 = vld [vmem:[%s406_s3 + $0x68] sm:$0xff] }
   0x4   :  { %49 = vmatpush.msra.mxu0 %v42_v1  ;;  %182 = vmatpush.msra.mxu3 %v42_v1  ;;  %v37_v9 = vld [vmem:[%s405_s1 + $0x48] sm:$0xff]  ;;  %v89_v10 = vld [vmem:[%s406_s3 + $0x60] sm:$0xff]  ;;  %v88_v12 = vld [vmem:[%s406_s3 + $0x58] sm:$0xff] }
   0x5   :  { %97 = vmatpush.msra.mxu1 %v92_v5  ;;  %v36_v11 = vld [vmem:[%s405_s1 + $0x40] sm:$0xff]  ;;  %v35_v13 = vld [vmem:[%s405_s1 + $0x38] sm:$0xff]  ;;  %v87_v14 = vld [vmem:[%s406_s3 + $0x50] sm:$0xff] }
   0x6   :  { %50 = vmatpush.msra.mxu0 %v41_v2  ;;  %183 = vmatpush.msra.mxu3 %v41_v2  ;;  %v34_v15 = vld [vmem:[%s405_s1 + $0x30] sm:$0xff]  ;;  %v86_v16 = vld [vmem:[%s406_s3 + $0x48] sm:$0xff]  ;;  %v85_v18 = vld [vmem:[%s406_s3 + $0x40] sm:$0xff] }
   0x7   :  { %98 = vmatpush.msra.mxu1 %v91_v6  ;;  %v33_v17 = vld [vmem:[%s405_s1 + $0x28] sm:$0xff]  ;;  %v32_v19 = vld [vmem:[%s405_s1 + $0x20] sm:$0xff]  ;;  %v84_v20 = vld [vmem:[%s406_s3 + $0x38] sm:$0xff] }
   0x8   :  { %51 = vmatpush.msra.mxu0 %v40_v3  ;;  %184 = vmatpush.msra.mxu3 %v40_v3  ;;  %v31_v21 = vld [vmem:[%s405_s1 + $0x18] sm:$0xff]  ;;  %v83_v22 = vld [vmem:[%s406_s3 + $0x30] sm:$0xff]  ;;  %v82_v24 = vld [vmem:[%s406_s3 + $0x28] sm:$0xff] }
   0x9   :  { %99 = vmatpush.msra.mxu1 %v90_v8  ;;  %v30_v23 = vld [vmem:[%s405_s1 + $0x10] sm:$0xff]  ;;  %v29_v25 = vld [vmem:[%s405_s1 + $0x8] sm:$0xff]  ;;  %v81_v26 = vld [vmem:[%s406_s3 + $0x20] sm:$0xff] }
   0xa   :  { %52 = vmatpush.msra.mxu0 %v39_v4  ;;  %185 = vmatpush.msra.mxu3 %v39_v4  ;;  %v28_v27 = vld [vmem:[%s405_s1] sm:$0xff]  ;;  %v27_v29 = vld [vmem:[%s408_s0 + $0x8] sm:$0xff]  ;;  %v80_v30 = vld [vmem:[%s406_s3 + $0x18] sm:$0xff] }
   0xb   :  { %100 = vmatpush.msra.mxu1 %v89_v10  ;;  %v26_v28 = vld [vmem:[%s408_s0] sm:$0xff]  ;;  %v79_v31 = vld [vmem:[%s406_s3 + $0x10] sm:$0xff]  ;;  %v78_v32 = vld [vmem:[%s406_s3 + $0x8] sm:$0xff] }
   0xc   :  { %53 = vmatpush.msra.mxu0 %v38_v7  ;;  %186 = vmatpush.msra.mxu3 %v38_v7  ;;  %v77_v33 = vld [vmem:[%s406_s3] sm:$0xff]  ;;  %v141_v34 = vld [vmem:[%s410_s5 + $0x78] sm:$0xff]  ;;  %v140_v35 = vld [vmem:[%s410_s5 + $0x70] sm:$0xff] }
   0xd   :  { %101 = vmatpush.msra.mxu1 %v88_v12  ;;  %146 = vmatpush.msra.mxu2 %v141_v34  ;;  %v139_v36 = vld [vmem:[%s410_s5 + $0x68] sm:$0xff]  ;;  %v138_v37 = vld [vmem:[%s410_s5 + $0x60] sm:$0xff]  ;;  %v137_v38 = vld [vmem:[%s410_s5 + $0x58] sm:$0xff] }
   0xe   :  { %54 = vmatpush.msra.mxu0 %v37_v9  ;;  %187 = vmatpush.msra.mxu3 %v37_v9  ;;  %v136_v39 = vld [vmem:[%s410_s5 + $0x50] sm:$0xff]  ;;  %v135_v40 = vld [vmem:[%s410_s5 + $0x48] sm:$0xff]  ;;  %v134_v41 = vld [vmem:[%s410_s5 + $0x40] sm:$0xff] }
   0xf   :  { %102 = vmatpush.msra.mxu1 %v87_v14  ;;  %147 = vmatpush.msra.mxu2 %v140_v35  ;;  %v133_v42 = vld [vmem:[%s410_s5 + $0x38] sm:$0xff]  ;;  %v197_v43 = vld [vmem:[%s407_s2] ss:$0 sm:$0xff]  ;;  %v132_v44 = vld [vmem:[%s410_s5 + $0x30] sm:$0xff] }
  0x10   :  { %55 = vmatpush.msra.mxu0 %v36_v11  ;;  %188 = vmatpush.msra.mxu3 %v36_v11  ;;  %v131_v46 = vld [vmem:[%s410_s5 + $0x28] sm:$0xff]  ;;  %v130_v48 = vld [vmem:[%s410_s5 + $0x20] sm:$0xff]  ;;  %v129_v50 = vld [vmem:[%s410_s5 + $0x18] sm:$0xff] }
  0x11   :  { %103 = vmatpush.msra.mxu1 %v86_v16  ;;  %148 = vmatpush.msra.mxu2 %v139_v36  ;;  %v128_v56 = vld [vmem:[%s410_s5 + $0x10] sm:$0xff]  ;;  %v127_v57 = vld [vmem:[%s410_s5 + $0x8] sm:$0xff]  ;;  %v126_v58 = vld [vmem:[%s410_s5] sm:$0xff] }
  0x12   :  { %56 = vmatpush.msra.mxu0 %v35_v13  ;;  %189 = vmatpush.msra.mxu3 %v35_v13  ;;  %v198_v59 = vld [vmem:[%s409_s4] ss:$0 sm:$0xff] }
  0x13   :  { %104 = vmatpush.msra.mxu1 %v85_v18  ;;  %149 = vmatpush.msra.mxu2 %v138_v37  ;;  %v199_v4 = vld [vmem:[%s411_s6] ss:$0 sm:$0xff] }
  0x14   :  { %57 = vmatpush.msra.mxu0 %v34_v15  ;;  %190 = vmatpush.msra.mxu3 %v34_v15 }
  0x15   :  { %105 = vmatpush.msra.mxu1 %v84_v20  ;;  %150 = vmatpush.msra.mxu2 %v137_v38 }
  0x16   :  { %58 = vmatpush.msra.mxu0 %v33_v17  ;;  %191 = vmatpush.msra.mxu3 %v33_v17 }
  0x17   :  { %106 = vmatpush.msra.mxu1 %v83_v22  ;;  %151 = vmatpush.msra.mxu2 %v136_v39 }
  0x18   :  { %59 = vmatpush.msra.mxu0 %v32_v19  ;;  %192 = vmatpush.msra.mxu3 %v32_v19 }
  0x19   :  { %107 = vmatpush.msra.mxu1 %v82_v24  ;;  %152 = vmatpush.msra.mxu2 %v135_v40 }
  0x1a   :  { %60 = vmatpush.msra.mxu0 %v31_v21  ;;  %193 = vmatpush.msra.mxu3 %v31_v21 }
  0x1b   :  { %108 = vmatpush.msra.mxu1 %v81_v26  ;;  %153 = vmatpush.msra.mxu2 %v134_v41 }
  0x1c   :  { %61 = vmatpush.msra.mxu0 %v30_v23  ;;  %194 = vmatpush.msra.mxu3 %v30_v23 }
  0x1d   :  { %109 = vmatpush.msra.mxu1 %v80_v30  ;;  %154 = vmatpush.msra.mxu2 %v133_v42 }
  0x1e   :  { %62 = vmatpush.msra.mxu0 %v29_v25  ;;  %195 = vmatpush.msra.mxu3 %v29_v25 }
  0x1f   :  { %110 = vmatpush.msra.mxu1 %v79_v31  ;;  %155 = vmatpush.msra.mxu2 %v132_v44 }
  0x20   :  { %63 = vmatpush.msra.mxu0 %v28_v27  ;;  %196 = vmatpush.msra.mxu3 %v28_v27 }
  0x21   :  { %64 = vmatmul.f32.vlgmr.msra.gmra.mxu0 %v26_v28  ;;  %67 = vmatmul.f32.vlgmr.msra.gmra.mxu3 %v27_v29 }
  0x22   :  { %111 = vmatpush.msra.mxu1 %v78_v32  ;;  %156 = vmatpush.msra.mxu2 %v131_v46 }
  0x24   :  { %112 = vmatpush.msra.mxu1 %v77_v33  ;;  %157 = vmatpush.msra.mxu2 %v130_v48 }
  0x26   :  { %158 = vmatpush.msra.mxu2 %v129_v50 }
  0x28   :  { %159 = vmatpush.msra.mxu2 %v128_v56 }
  0x2a   :  { %160 = vmatpush.msra.mxu2 %v127_v57 }
  0x2c   :  { %161 = vmatpush.msra.mxu2 %v126_v58 }
  0x9e   :  { %v65_v45 = vpop.f32.mrf.mxu0 }
  0x9f   :  { %v66_v47 = vadd.f32 %v197_v43, %v65_v45 }
  0xa1   :  { %vm71_vm0 = vcmp.gt.f32.partialorder %v66_v47, 0.0  ;;  %v73_v49 = vmul.f32 0.01, %v66_v47 }
  0xa3   :  { %v75_v51 = vsel %vm71_vm0, %v66_v47, %v73_v49 }
  0xa4   :  { %v68_v52 = vpop.f32.mrf.mxu3  ;;  %113 = vmatmul.f32.vlgmr.msra.gmra.mxu1 %v75_v51 }
  0xa5   :  { %v69_v53 = vadd.f32 %v197_v43, %v68_v52 }
  0xa7   :  { %v74_v54 = vmul.f32 0.01, %v69_v53  ;;  %vm72_vm1 = vcmp.gt.f32.partialorder %v69_v53, 0.0 }
  0xa9   :  { %v76_v55 = vsel %vm72_vm1, %v69_v53, %v74_v54 }
  0xac   :  { %116 = vmatmul.f32.gmra.mxu1 %v76_v55 }
 0x121   :  { %v114_v60 = vpop.f32.mrf.mxu1 }
 0x122   :  { %v115_v61 = vadd.f32 %v198_v59, %v114_v60 }
 0x124   :  { %vm120_vm2 = vcmp.gt.f32.partialorder %v115_v61, 0.0  ;;  %v122_v62 = vmul.f32 0.01, %v115_v61 }
 0x126   :  { %v124_v63 = vsel %vm120_vm2, %v115_v61, %v122_v62 }
 0x127   :  { %162 = vmatmul.f32.vlgmr.msra.gmra.mxu2 %v124_v63 }
 0x129   :  { %v117_v0 = vpop.f32.mrf.mxu1 }
 0x12a   :  { %v118_v1 = vadd.f32 %v198_v59, %v117_v0 }
 0x12c   :  { %vm121_vm3 = vcmp.gt.f32.partialorder %v118_v1, 0.0  ;;  %v123_v2 = vmul.f32 0.01, %v118_v1 }
 0x12e   :  { %v125_v3 = vsel %vm121_vm3, %v118_v1, %v123_v2 }
 0x12f   :  { %165 = vmatmul.f32.gmra.mxu2 %v125_v3 }
 0x1aa   :  { %v163_v5 = vpop.f32.mrf.mxu2 }
 0x1ab   :  { %v164_v6 = vadd.f32 %v199_v4, %v163_v5 }
 0x1ad   :  { %vm169_vm4 = vcmp.gt.f32.partialorder %v164_v6, 0.0  ;;  %v171_v7 = vmul.f32 0.01, %v164_v6 }
 0x1af   :  { %v173_v8 = vsel %vm169_vm4, %v164_v6, %v171_v7 }
 0x1b0   :  { %175 = vst [vmem:[%s412_s7] sm:$0xff] %v173_v8 }
 0x1b2   :  { %v166_v9 = vpop.f32.mrf.mxu2 }
 0x1b3   :  { %v167_v10 = vadd.f32 %v199_v4, %v166_v9 }
 0x1b5   :  { %vm170_vm5 = vcmp.gt.f32.partialorder %v167_v10, 0.0  ;;  %v172_v11 = vmul.f32 0.01, %v167_v10 }
 0x1b7   :  { %v174_v12 = vsel %vm170_vm5, %v167_v10, %v172_v11 }
 0x1b8   :  { %176 = vst [vmem:[%s412_s7 + $0x8] sm:$0xff] %v174_v12 }

</bundles_post_ra>
